<compile_context>
chip_gen: v5e
topology: v5e:2x2
jax: 0.10.0
libtpu: 0.0.40
codegen_flags: <defaults>
</compile_context>

<pallas_src>
import functools

import jax
import jax.numpy as jnp
from jax.experimental import pallas as pl
from jax.experimental.pallas import tpu as pltpu

LN_EPS = 1e-5  # torch.nn.LayerNorm default


def _round_up(n, m):
    return ((n + m - 1) // m) * m


def _vmem_capacity_bytes():
    """Physical VMEM per TensorCore; conservative 64 MiB fallback."""
    try:
        info = pltpu.get_tpu_info()
        cap = getattr(info, "vmem_capacity_bytes", None)
        if cap:
            return int(cap)
    except Exception:
        pass
    return 64 * 1024 * 1024


def _spec(shape, index_map, *, single_buffer=False):
    """BlockSpec; grid-invariant operands get a 1-deep pipeline buffer."""
    if single_buffer and hasattr(pl, "Buffered"):
        try:
            return pl.BlockSpec(shape, index_map, pipeline_mode=pl.Buffered(1))
        except TypeError:
            pass
    return pl.BlockSpec(shape, index_map)


def prenorm_residual_kernel(x_ref, g_ref, b_ref, w1_ref, b1_ref, w2_ref, b2_ref,
                            o_ref, xn_ref, acc_ref, *, inv_dim):
    # x_ref: (tile_r, D_pad) in x.dtype; g/b/b2: (1, D_pad) f32; b1: (1, tile_h) f32
    # w1: (D_pad, tile_h) bf16; w2: (tile_h, D_pad) bf16
    # xn_ref: (tile_r, D_pad) bf16 scratch; acc_ref: (tile_r, D_pad) f32 scratch
    h_idx = pl.program_id(1)

    @pl.when(h_idx == 0)
    def _():
        # --- LayerNorm over the real `dim` lanes (padded lanes of x are zero,
        #     so plain sums equal the true sums; divide by the real dim).
        #     Biased variance via E[x^2] - mu^2, like torch. ---
        x = x_ref[...].astype(jnp.float32)
        s1 = jnp.sum(x, axis=-1, keepdims=True)
        s2 = jnp.sum(x * x, axis=-1, keepdims=True)
        mu = s1 * inv_dim
        var = jnp.maximum(s2 * inv_dim - mu * mu, 0.0)
        xn = (x - mu) * jax.lax.rsqrt(var + LN_EPS)
        # gamma/beta are zero in padded lanes -> padded lanes of xn become 0.
        xn = xn * g_ref[...] + b_ref[...]
        xn_ref[...] = xn.astype(xn_ref.dtype)       # bf16 MXU operand, cached
        acc_ref[...] = jnp.zeros_like(acc_ref)

    # --- fn: FeedForward = Linear -> GELU -> Linear, over one H block ---
    h = jnp.dot(xn_ref[...], w1_ref[...], preferred_element_type=jnp.float32)
    h = jax.nn.gelu(h + b1_ref[...])                # gelu(0)=0, padded lanes stay 0
    acc_ref[...] += jnp.dot(h.astype(jnp.bfloat16), w2_ref[...],
                            preferred_element_type=jnp.float32)

    @pl.when(h_idx == pl.num_programs(1) - 1)
    def _():
        # residual: re-read x from VMEM instead of keeping it live in vregs
        o_ref[...] = (acc_ref[...] + b2_ref[...]
                      + x_ref[...].astype(jnp.float32)).astype(o_ref.dtype)


def prenorm_residual(x, gamma, beta, w1, b1, w2, b2, *, tile_r=None):
    """x: (B, S, D). Returns fn(LayerNorm(x)) + x with same shape/dtype."""
    B, S, D = x.shape
    H = w1.shape[1]
    rows = B * S

    # --- generation-aware VMEM budget / row-tile default ---
    phys_vmem = _vmem_capacity_bytes()
    vmem_limit = min(phys_vmem - (16 << 20), 100 << 20)   # 48 MiB on v7x, ~100 MiB on v5e/v6e
    if tile_r is None:
        tile_r = 512 if phys_vmem >= (100 << 20) else 256

    # --- lane-dense feature padding only when needed ---
    D_pad = _round_up(D, 128)
    H_pad = _round_up(H, 128)

    # --- row tiling: pad rows only to the f32 sublane multiple (8) ---
    rows_p = _round_up(rows, 8)
    tile_r = max(8, min(_round_up(tile_r, 8), rows_p))
    if rows_p > 8:
        # keep grid_r >= 2 so the "parallel" axis can use both TCs on v7x
        tile_r = min(tile_r, _round_up(pl.cdiv(rows_p, 2), 8))
    grid_r = pl.cdiv(rows_p, tile_r)                 # last row tile may be partial

    # --- weight residency vs. H streaming ---
    weight_budget = max(8 << 20, vmem_limit // 3)
    if 4 * D_pad * H_pad <= weight_budget:           # w1+w2 bf16, single-buffered
        tile_h = H_pad
    else:
        # double-buffered (D_pad, tile_h) + (tile_h, D_pad) bf16 blocks per step
        max_blocks = max(1, weight_budget // (8 * D_pad * 128))
        tile_h = 128
        for t in range(min(max_blocks, H_pad // 128), 0, -1):
            if (H_pad // 128) % t == 0:               # tile_h must divide H_pad
                tile_h = t * 128
                break
    grid_h = H_pad // tile_h
    weights_resident = grid_h == 1

    f32, bf16 = jnp.float32, jnp.bfloat16

    # --- operand prep: skip copies whenever shapes already conform ---
    x2 = x.reshape(rows, D)
    if rows_p != rows or D_pad != D:
        x2 = jnp.zeros((rows_p, D_pad), x.dtype).at[:rows, :D].set(x2)

    g2 = gamma.astype(f32).reshape(1, D)
    bt2 = beta.astype(f32).reshape(1, D)
    b2_ = b2.astype(f32).reshape(1, D)
    if D_pad != D:
        g2 = jnp.zeros((1, D_pad), f32).at[:, :D].set(g2)
        bt2 = jnp.zeros((1, D_pad), f32).at[:, :D].set(bt2)
        b2_ = jnp.zeros((1, D_pad), f32).at[:, :D].set(b2_)

    w1p = w1.astype(bf16)
    w2p = w2.astype(bf16)
    b1p = b1.astype(f32).reshape(1, H)
    if D_pad != D or H_pad != H:
        w1p = jnp.zeros((D_pad, H_pad), bf16).at[:D, :H].set(w1p)
        w2p = jnp.zeros((H_pad, D_pad), bf16).at[:H, :D].set(w2p)
    if H_pad != H:
        b1p = jnp.zeros((1, H_pad), f32).at[:, :H].set(b1p)

    in_specs = [
        # streamed x (bump to pl.Buffered(3) if profiling shows exposed DMA)
        pl.BlockSpec((tile_r, D_pad), lambda r, h: (r, 0)),
        _spec((1, D_pad), lambda r, h: (0, 0), single_buffer=True),               # gamma
        _spec((1, D_pad), lambda r, h: (0, 0), single_buffer=True),               # beta
        _spec((D_pad, tile_h), lambda r, h: (0, h), single_buffer=weights_resident),  # w1
        _spec((1, tile_h), lambda r, h: (0, h), single_buffer=weights_resident),      # b1
        _spec((tile_h, D_pad), lambda r, h: (h, 0), single_buffer=weights_resident),  # w2
        _spec((1, D_pad), lambda r, h: (0, 0), single_buffer=True),               # b2
    ]
    out_spec = pl.BlockSpec((tile_r, D_pad), lambda r, h: (r, 0))

    w_bytes = (w1p.size + w2p.size) * 2
    if grid_h > 1:
        w_bytes *= grid_r                              # re-streamed per row tile
    bytes_accessed = (2 * rows_p * D_pad * x.dtype.itemsize + w_bytes
                      + (g2.size + bt2.size + b1p.size + b2_.size) * 4)
    cost = pl.CostEstimate(
        flops=4 * rows_p * D_pad * H_pad,              # two matmuls
        transcendentals=rows_p * (H_pad + 1),          # gelu tanh + rsqrt
        bytes_accessed=int(bytes_accessed))

    out = pl.pallas_call(
        functools.partial(prenorm_residual_kernel, inv_dim=1.0 / D),
        out_shape=jax.ShapeDtypeStruct((rows_p, D_pad), x.dtype),
        grid_spec=pltpu.PrefetchScalarGridSpec(
            num_scalar_prefetch=0,
            grid=(grid_r, grid_h),
            in_specs=in_specs,
            out_specs=out_spec,
            scratch_shapes=[pltpu.VMEM((tile_r, D_pad), bf16),    # cached LN output
                            pltpu.VMEM((tile_r, D_pad), f32)],    # f32 accumulator
        ),
        compiler_params=pltpu.CompilerParams(
            dimension_semantics=("parallel", "arbitrary"),
            vmem_limit_bytes=int(vmem_limit),
        ),
        cost_estimate=cost,
    )(x2, g2, bt2, w1p, b1p, w2p, b2_)

    if rows_p != rows or D_pad != D:
        out = out[:rows, :D]
    return out.reshape(B, S, D)


def reference(x, gamma, beta, w1, b1, w2, b2, *, bf16_matmul=True):
    """Pure-JAX reference.  bf16_matmul=True mirrors the kernel's MXU precision."""
    xf = x.astype(jnp.float32)
    mu = jnp.mean(xf, axis=-1, keepdims=True)
    var = jnp.mean((xf - mu) ** 2, axis=-1, keepdims=True)
    xn = (xf - mu) * jax.lax.rsqrt(var + LN_EPS) * gamma + beta
    if bf16_matmul:
        h = jnp.dot(xn.astype(jnp.bfloat16), w1.astype(jnp.bfloat16),
                    preferred_element_type=jnp.float32) + b1
        h = jax.nn.gelu(h)
        y = jnp.dot(h.astype(jnp.bfloat16), w2.astype(jnp.bfloat16),
                    preferred_element_type=jnp.float32) + b2
    else:
        h = jax.nn.gelu(xn @ w1 + b1)
        y = h @ w2 + b2
    return (y + xf).astype(x.dtype)


if __name__ == "__main__":
    key = jax.random.PRNGKey(0)
    B, S, D, HID = 2, 8, 32, 64   # batch, seq, dim, hidden of fn's MLP

    kx, k1, k2 = jax.random.split(key, 3)
    x = jax.random.normal(kx, (B, S, D), dtype=jnp.float32)

    # LayerNorm params: PyTorch default init (ones / zeros)
    gamma = jnp.ones((D,), jnp.float32)
    beta = jnp.zeros((D,), jnp.float32)

    # fn (FeedForward) params: deterministic synthetic init
    w1 = jax.random.normal(k1, (D, HID), jnp.float32) * 0.05
    b1 = jnp.zeros((HID,), jnp.float32)
    w2 = jax.random.normal(k2, (HID, D), jnp.float32) * 0.05
    b2 = jnp.zeros((D,), jnp.float32)

    out = jax.block_until_ready(prenorm_residual(x, gamma, beta, w1, b1, w2, b2))

    ref_mixed = reference(x, gamma, beta, w1, b1, w2, b2, bf16_matmul=True)
    ref_f32 = reference(x, gamma, beta, w1, b1, w2, b2, bf16_matmul=False)

    assert out.shape == x.shape and out.dtype == x.dtype
    assert jnp.allclose(out, ref_mixed, atol=2e-3, rtol=2e-3), "mismatch vs mixed-precision reference"
    assert jnp.allclose(out, ref_f32, atol=3e-2, rtol=3e-2), "mismatch vs f32 reference"

    print("KERNEL_OK")
</pallas_src>

<mosaic_0001>
module attributes {stable_mosaic.version = 11 : i64} {
  func.func @prenorm_residual_kernel(%arg0: i32, %arg1: i32, %arg2: memref<8x128xf32, #tpu.memory_space<vmem>>, %arg3: memref<1x128xf32, #tpu.memory_space<vmem>>, %arg4: memref<1x128xf32, #tpu.memory_space<vmem>>, %arg5: memref<128x128xbf16, #tpu.memory_space<vmem>>, %arg6: memref<1x128xf32, #tpu.memory_space<vmem>>, %arg7: memref<128x128xbf16, #tpu.memory_space<vmem>>, %arg8: memref<1x128xf32, #tpu.memory_space<vmem>>, %arg9: memref<8x128xf32, #tpu.memory_space<vmem>>, %arg10: memref<8x128xbf16, #tpu.memory_space<vmem>>, %arg11: memref<8x128xf32, #tpu.memory_space<vmem>>) attributes {dimension_semantics = [#tpu.dimension_semantics<parallel>, #tpu.dimension_semantics<arbitrary>], iteration_bounds = array<i64: 2, 1>, scalar_prefetch = 0 : i64, scratch_operands = 2 : i64, tpu.core_type = #tpu.core_type<tc>, window_params = [{transform_indices = @transform_0, window_bounds = array<i64: 8, 128>}, {pipeline_mode = #tpu.pipeline_mode<synchronous>, transform_indices = @transform_1, window_bounds = array<i64: 1, 128>}, {pipeline_mode = #tpu.pipeline_mode<synchronous>, transform_indices = @transform_2, window_bounds = array<i64: 1, 128>}, {pipeline_mode = #tpu.pipeline_mode<synchronous>, transform_indices = @transform_3, window_bounds = array<i64: 128, 128>}, {pipeline_mode = #tpu.pipeline_mode<synchronous>, transform_indices = @transform_4, window_bounds = array<i64: 1, 128>}, {pipeline_mode = #tpu.pipeline_mode<synchronous>, transform_indices = @transform_5, window_bounds = array<i64: 128, 128>}, {pipeline_mode = #tpu.pipeline_mode<synchronous>, transform_indices = @transform_6, window_bounds = array<i64: 1, 128>}, {transform_indices = @transform_7, window_bounds = array<i64: 8, 128>}]} {
    %c0_i32 = arith.constant 0 : i32
    %0 = arith.cmpi eq, %arg1, %c0_i32 : i32
    %1 = arith.extui %0 : i1 to i32
    %c0_i32_0 = arith.constant 0 : i32
    %2 = arith.cmpi ne, %1, %c0_i32_0 : i32
    scf.if %2 {
      %c0_19 = arith.constant 0 : index
      %c0_20 = arith.constant 0 : index
      %31 = vector.load %arg2[%c0_19, %c0_20] : memref<8x128xf32, #tpu.memory_space<vmem>>, vector<8x128xf32>
      %cst_21 = arith.constant dense<0.000000e+00> : vector<8xf32>
      %32 = vector.multi_reduction <add>, %31, %cst_21 [1] : vector<8x128xf32> to vector<8xf32>
      %33 = vector.shape_cast %32 : vector<8xf32> to vector<8x1xf32>
      %34 = arith.mulf %31, %31 : vector<8x128xf32>
      %cst_22 = arith.constant dense<0.000000e+00> : vector<8xf32>
      %35 = vector.multi_reduction <add>, %34, %cst_22 [1] : vector<8x128xf32> to vector<8xf32>
      %36 = vector.shape_cast %35 : vector<8xf32> to vector<8x1xf32>
      %cst_23 = arith.constant 3.125000e-02 : f32
      %37 = vector.broadcast %cst_23 : f32 to vector<8x1xf32>
      %38 = arith.mulf %33, %37 : vector<8x1xf32>
      %cst_24 = arith.constant 3.125000e-02 : f32
      %39 = vector.broadcast %cst_24 : f32 to vector<8x1xf32>
      %40 = arith.mulf %36, %39 : vector<8x1xf32>
      %41 = arith.mulf %38, %38 : vector<8x1xf32>
      %42 = arith.subf %40, %41 : vector<8x1xf32>
      %cst_25 = arith.constant 0.000000e+00 : f32
      %43 = vector.broadcast %cst_25 : f32 to vector<8x1xf32>
      %44 = arith.maximumf %42, %43 : vector<8x1xf32>
      %45 = vector.broadcast %38 : vector<8x1xf32> to vector<8x128xf32>
      %46 = arith.subf %31, %45 : vector<8x128xf32>
      %cst_26 = arith.constant 9.99999974E-6 : f32
      %47 = vector.broadcast %cst_26 : f32 to vector<8x1xf32>
      %48 = arith.addf %44, %47 : vector<8x1xf32>
      %49 = math.rsqrt %48 : vector<8x1xf32>
      %50 = vector.broadcast %49 : vector<8x1xf32> to vector<8x128xf32>
      %51 = arith.mulf %46, %50 : vector<8x128xf32>
      %c0_27 = arith.constant 0 : index
      %c0_28 = arith.constant 0 : index
      %52 = vector.load %arg3[%c0_27, %c0_28] : memref<1x128xf32, #tpu.memory_space<vmem>>, vector<1x128xf32>
      %53 = vector.broadcast %52 : vector<1x128xf32> to vector<8x128xf32>
      %54 = arith.mulf %51, %53 : vector<8x128xf32>
      %c0_29 = arith.constant 0 : index
      %c0_30 = arith.constant 0 : index
      %55 = vector.load %arg4[%c0_29, %c0_30] : memref<1x128xf32, #tpu.memory_space<vmem>>, vector<1x128xf32>
      %56 = vector.broadcast %55 : vector<1x128xf32> to vector<8x128xf32>
      %57 = arith.addf %54, %56 : vector<8x128xf32>
      %58 = arith.truncf %57 : vector<8x128xf32> to vector<8x128xbf16>
      %c0_31 = arith.constant 0 : index
      %c0_32 = arith.constant 0 : index
      %59 = vector.load %arg10[%c0_31, %c0_32] : memref<8x128xbf16, #tpu.memory_space<vmem>>, vector<8x128xbf16>
      tpu.vector_store %arg10[%c0_31, %c0_32], %58 {strides = array<i32>} : memref<8x128xbf16, #tpu.memory_space<vmem>>, vector<8x128xbf16>,
      %cst_33 = arith.constant 0.000000e+00 : f32
      %60 = vector.broadcast %cst_33 : f32 to vector<8x128xf32>
      %c0_34 = arith.constant 0 : index
      %c0_35 = arith.constant 0 : index
      %61 = vector.load %arg11[%c0_34, %c0_35] : memref<8x128xf32, #tpu.memory_space<vmem>>, vector<8x128xf32>
      tpu.vector_store %arg11[%c0_34, %c0_35], %60 {strides = array<i32>} : memref<8x128xf32, #tpu.memory_space<vmem>>, vector<8x128xf32>,
    } else {
    }
    %c0 = arith.constant 0 : index
    %c0_1 = arith.constant 0 : index
    %3 = vector.load %arg10[%c0, %c0_1] : memref<8x128xbf16, #tpu.memory_space<vmem>>, vector<8x128xbf16>
    %c0_2 = arith.constant 0 : index
    %c0_3 = arith.constant 0 : index
    %4 = vector.load %arg5[%c0_2, %c0_3] : memref<128x128xbf16, #tpu.memory_space<vmem>>, vector<128x128xbf16>
    %cst = arith.constant dense<0.000000e+00> : vector<8x128xf32>
    %5 = tpu.matmul %3, %4, %cst {dimension_numbers = #tpu.dot_dimension_numbers<[1], [0], [0], [1], [0, 0, 1, 1], [], []>} : vector<8x128xbf16>, vector<128x128xbf16>, vector<8x128xf32> -> vector<8x128xf32>
    %c0_4 = arith.constant 0 : index
    %c0_5 = arith.constant 0 : index
    %6 = vector.load %arg6[%c0_4, %c0_5] : memref<1x128xf32, #tpu.memory_space<vmem>>, vector<1x128xf32>
    %7 = vector.broadcast %6 : vector<1x128xf32> to vector<8x128xf32>
    %8 = arith.addf %5, %7 : vector<8x128xf32>
    %9 = arith.mulf %8, %8 : vector<8x128xf32>
    %10 = arith.mulf %8, %9 : vector<8x128xf32>
    %cst_6 = arith.constant 4.471500e-02 : f32
    %11 = vector.broadcast %cst_6 : f32 to vector<8x128xf32>
    %12 = arith.mulf %11, %10 : vector<8x128xf32>
    %13 = arith.addf %8, %12 : vector<8x128xf32>
    %cst_7 = arith.constant 0.797884583 : f32
    %14 = vector.broadcast %cst_7 : f32 to vector<8x128xf32>
    %15 = arith.mulf %14, %13 : vector<8x128xf32>
    %16 = math.tanh %15 : vector<8x128xf32>
    %cst_8 = arith.constant 1.000000e+00 : f32
    %17 = vector.broadcast %cst_8 : f32 to vector<8x128xf32>
    %18 = arith.addf %17, %16 : vector<8x128xf32>
    %cst_9 = arith.constant 5.000000e-01 : f32
    %19 = vector.broadcast %cst_9 : f32 to vector<8x128xf32>
    %20 = arith.mulf %19, %18 : vector<8x128xf32>
    %21 = arith.mulf %8, %20 : vector<8x128xf32>
    %c0_10 = arith.constant 0 : index
    %c0_11 = arith.constant 0 : index
    %22 = vector.load %arg11[%c0_10, %c0_11] : memref<8x128xf32, #tpu.memory_space<vmem>>, vector<8x128xf32>
    %23 = arith.truncf %21 : vector<8x128xf32> to vector<8x128xbf16>
    %c0_12 = arith.constant 0 : index
    %c0_13 = arith.constant 0 : index
    %24 = vector.load %arg7[%c0_12, %c0_13] : memref<128x128xbf16, #tpu.memory_space<vmem>>, vector<128x128xbf16>
    %cst_14 = arith.constant dense<0.000000e+00> : vector<8x128xf32>
    %25 = tpu.matmul %23, %24, %cst_14 {dimension_numbers = #tpu.dot_dimension_numbers<[1], [0], [0], [1], [0, 0, 1, 1], [], []>} : vector<8x128xbf16>, vector<128x128xbf16>, vector<8x128xf32> -> vector<8x128xf32>
    %26 = arith.addf %22, %25 : vector<8x128xf32>
    %c0_15 = arith.constant 0 : index
    %c0_16 = arith.constant 0 : index
    %27 = vector.load %arg11[%c0_15, %c0_16] : memref<8x128xf32, #tpu.memory_space<vmem>>, vector<8x128xf32>
    tpu.vector_store %arg11[%c0_15, %c0_16], %26 {strides = array<i32>} : memref<8x128xf32, #tpu.memory_space<vmem>>, vector<8x128xf32>,
    %c0_i32_17 = arith.constant 0 : i32
    %28 = arith.cmpi eq, %arg1, %c0_i32_17 : i32
    %29 = arith.extui %28 : i1 to i32
    %c0_i32_18 = arith.constant 0 : i32
    %30 = arith.cmpi ne, %29, %c0_i32_18 : i32
    scf.if %30 {
      %c0_19 = arith.constant 0 : index
      %c0_20 = arith.constant 0 : index
      %31 = vector.load %arg11[%c0_19, %c0_20] : memref<8x128xf32, #tpu.memory_space<vmem>>, vector<8x128xf32>
      %c0_21 = arith.constant 0 : index
      %c0_22 = arith.constant 0 : index
      %32 = vector.load %arg8[%c0_21, %c0_22] : memref<1x128xf32, #tpu.memory_space<vmem>>, vector<1x128xf32>
      %33 = vector.broadcast %32 : vector<1x128xf32> to vector<8x128xf32>
      %34 = arith.addf %31, %33 : vector<8x128xf32>
      %c0_23 = arith.constant 0 : index
      %c0_24 = arith.constant 0 : index
      %35 = vector.load %arg2[%c0_23, %c0_24] : memref<8x128xf32, #tpu.memory_space<vmem>>, vector<8x128xf32>
      %36 = arith.addf %34, %35 : vector<8x128xf32>
      %c0_25 = arith.constant 0 : index
      %c0_26 = arith.constant 0 : index
      %37 = vector.load %arg9[%c0_25, %c0_26] : memref<8x128xf32, #tpu.memory_space<vmem>>, vector<8x128xf32>
      tpu.vector_store %arg9[%c0_25, %c0_26], %36 {strides = array<i32>} : memref<8x128xf32, #tpu.memory_space<vmem>>, vector<8x128xf32>,
    } else {
    }
    return
  }
  func.func @transform_0(%arg0: i32, %arg1: i32) -> (i32, i32) {
    %c0_i32 = arith.constant 0 : i32
    %c0_i32_0 = arith.constant 0 : i32
    return %arg0, %c0_i32 : i32, i32
  }
  func.func @transform_1(%arg0: i32, %arg1: i32) -> (i32, i32) {
    %c0_i32 = arith.constant 0 : i32
    %c0_i32_0 = arith.constant 0 : i32
    %c0_i32_1 = arith.constant 0 : i32
    return %c0_i32, %c0_i32_0 : i32, i32
  }
  func.func @transform_2(%arg0: i32, %arg1: i32) -> (i32, i32) {
    %c0_i32 = arith.constant 0 : i32
    %c0_i32_0 = arith.constant 0 : i32
    %c0_i32_1 = arith.constant 0 : i32
    return %c0_i32, %c0_i32_0 : i32, i32
  }
  func.func @transform_3(%arg0: i32, %arg1: i32) -> (i32, i32) {
    %c0_i32 = arith.constant 0 : i32
    %c0_i32_0 = arith.constant 0 : i32
    return %c0_i32, %arg1 : i32, i32
  }
  func.func @transform_4(%arg0: i32, %arg1: i32) -> (i32, i32) {
    %c0_i32 = arith.constant 0 : i32
    %c0_i32_0 = arith.constant 0 : i32
    return %c0_i32, %arg1 : i32, i32
  }
  func.func @transform_5(%arg0: i32, %arg1: i32) -> (i32, i32) {
    %c0_i32 = arith.constant 0 : i32
    %c0_i32_0 = arith.constant 0 : i32
    return %arg1, %c0_i32 : i32, i32
  }
  func.func @transform_6(%arg0: i32, %arg1: i32) -> (i32, i32) {
    %c0_i32 = arith.constant 0 : i32
    %c0_i32_0 = arith.constant 0 : i32
    %c0_i32_1 = arith.constant 0 : i32
    return %c0_i32, %c0_i32_0 : i32, i32
  }
  func.func @transform_7(%arg0: i32, %arg1: i32) -> (i32, i32) {
    %c0_i32 = arith.constant 0 : i32
    %c0_i32_0 = arith.constant 0 : i32
    return %arg0, %c0_i32 : i32, i32
  }
}

</mosaic_0001>

<bundles_post_ra>
// kernel: tpu_custom_call.1
= control target key start
LH: loop header
LB: loop body
LE: loop exit
PB: predicated region body
PF: predicated region fallthrough
CT: control target
= control target key end

     0   :  { %s1401_s0 = inlined_call_operand.hbm [shape: f32[16,128], index: 0, kind: input, shape index: {}]   ;;  %s1402_s1 = inlined_call_operand.hbm [shape: f32[1,128], index: 1, kind: input, shape index: {}]   ;;  %s1403_s2 = inlined_call_operand.vmem [shape: f32[1,128], index: 2, kind: input, shape index: {}]   ;;  %s1404_s3 = inlined_call_operand.hbm [shape: bf16[128,128], index: 3, kind: input, shape index: {}]   ;;  %s1405_s4 = inlined_call_operand.vmem [shape: f32[1,128], index: 4, kind: input, shape index: {}]   ;;  %s1406_s5 = inlined_call_operand.hbm [shape: bf16[128,128], index: 5, kind: input, shape index: {}]   ;;  %s1407_s6 = inlined_call_operand.vmem [shape: f32[1,128], index: 6, kind: input, shape index: {}]   ;;  %s1408_s7 = inlined_call_operand.hbm [shape: f32[16,128], index: 7, kind: output, shape index: {}]  }
   0x1   :  { %1409 = sst [smem:[#allocation17_spill]] %s1402_s1 }
   0x2   :  { %1410 = sst [smem:[#allocation18_spill]] %s1404_s3 }
   0x3   :  { %1411 = sst [smem:[#allocation19_spill]] %s1406_s5 }
   0x4   :  { %12 = vsyncpa [#allocation5], 0 }
   0x5   :  { %14 = vsyncpa [#allocation5 + $0x1], 0 }
   0x6   :  { %15 = vsyncpa [#allocation8], 0 }
   0x7   :  { %16 = vsyncpa [#allocation11], 0 }
   0x8   :  { %17 = vsyncpa [#allocation6], 0 }
   0x9   :  { %19 = vsyncpa [#allocation6 + $0x1], 0  ;;  %s1210_s24 = smov 0   ;;  %s1212_s25 = smov 0  }
   0xa   :  { %s1214_s26 = smov 0   ;;  %s1216_s27 = smov 0  }
   0xb   :  { %s1218_s28 = smov 0   ;;  %s1220_s29 = smov 0  }
   0xc LB: > { %s750_s30 = sadd.s32 4294967295, %s1163_s29   ;;  %s751_s8 = sadd.s32 4294967294, %s1163_s29   ;;  %s1163_s29 = sphi %s1220_s29, %s25_s29   ;;  %s1159_s28 = sphi %s1218_s28, %s1427_s28   ;;  %s1155_s27 = sphi %s1216_s27, %s1426_s27   ;;  %s1151_s26 = sphi %s1214_s26, %s1425_s26   ;;  %s1147_s25 = sphi %s1212_s25, %s1424_s25   ;;  %s1143_s24 = sphi %s1210_s24, %s1423_s24  }
   0xd   : > { %p57_p0 = scmp.ne.s32.totalorder %s1147_s25, %s1143_s24  ;;  %p1244_p1 = scmp.eq.s32.totalorder %s750_s30, 0 }
   0xe   : > { %p1248_p2 = scmp.eq.s32.totalorder %s750_s30, 1  ;;  %p228_p3 = scmp.eq.s32.totalorder %s751_s8, 1 }
   0xf   : > { %p1254_p4 = por %p1244_p1, %p57_p0  ;;  %p752_p5 = scmp.ge.s32.totalorder %s1163_s29, 1 }
  0x10   : > { %p1259_p6 = por %p228_p3, %p57_p0  ;;  %p235_p7 = scmp.lt.s32.totalorder %s1163_s29, 3 }
  0x11   : > { %s1416_s1 = sld [smem:[#allocation17_spill]]  ;;  %p757_p9 = scmp.ge.s32.totalorder %s1163_s29, 2 }
  0x12   : > { %p1267_p8 = pnand %p752_p5, %p235_p7  ;;  %s1165_s17 = smov [#allocation7]  }
  0x13   : > { %s249_s18 = sshll.u32 %s1165_s17, 4  ;;  %s1418_s3 = sld [smem:[#allocation18_spill]]  ;;  %s250_s18 = int_to_ptr.vmem [resolvable:$true] %s249_s18 }
  0x14   : > { %p866_p10 = pneg %p1267_p8  ;;  %s1166_s23 = smov [#allocation9]  }
  0x15   : > { %s265_s30 = sshll.u32 %s1166_s23, 4  ;;  %s1167_s8 = smov 64   ;;  %s266_s30 = int_to_ptr.vmem [resolvable:$true] %s265_s30 }
  0x16   : > { %p1279_p11 = pnand %p866_p10, %p1244_p1  ;;  %s1168_s13 = smov 4  }
  0x17   : > { %s247_s15 = sshll.u32 %s1416_s1, 4  ;;  %s1420_s5 = sld [smem:[#allocation19_spill]]  ;;  %s248_s15 = int_to_ptr.hbm [resolvable:$true] %s247_s15 }
  0x18   : > { %869 = dma.hbm_to_vmem [thread:$0]  (!%p1279_p11), %s248_s15, 16, %s250_s18, [#allocation8]  }
  0x19   : > { %s263_s21 = sshll.u32 %s1418_s3, 4  ;;  %s1169_s20 = smov [#allocation10]   ;;  %s264_s21 = int_to_ptr.hbm [resolvable:$true] %s263_s21 }
  0x1a   : > { %872 = dma.hbm_to_vmem [thread:$0]  (!%p1279_p11), %s264_s21, 1024, %s266_s30, [#allocation8], %s1167_s8, %s1167_s8, %s1168_s13  }
  0x1b   : > { %s288_s1 = sshll.u32 %s1169_s20, 4  ;;  %s44_s15 = sadd.s32 1, %s1151_s26  ;;  %s289_s1 = int_to_ptr.vmem [resolvable:$true] %s288_s1 }
  0x1c   : > { %s37_s18 = sadd.s32 1, %s1159_s28  ;;  %p51_p12 = scmp.ne.s32.totalorder %s1151_s26, %s1147_s25 }
  0x1d   : > { %s286_s19 = sshll.u32 %s1420_s5, 4  ;;  %p39_p13 = scmp.ge.s32.totalorder %s37_s18, 2  ;;  %s287_s19 = int_to_ptr.hbm [resolvable:$true] %s286_s19 }
  0x1e   : > { %875 = dma.hbm_to_vmem [thread:$0]  (!%p1279_p11), %s287_s19, 1024, %s289_s1, [#allocation11], %s1167_s8, %s1167_s8, %s1168_s13  }
  0x1f   : > { %p52_p0 = scmp.eq.s32.totalorder %s1163_s29, 0  ;;  %p1299_p3 = por %p1248_p2, %p51_p12 }
  0x20   : > { %p887_p5 = scmp.lt.s32.totalorder %s1163_s29, 2  ;;  %s1429_s18 = smov (%p39_p13, %s37_s18), 0 }
  0x21   : > { %p1306_p7 = por %p52_p0, %p51_p12  ;;  %s305_s1 = sand.u32 1, %s1151_s26  }
  0x22   : > { %s41_s22 = ssub.s32 %s1159_s28, %s1429_s18  ;;  %s758_s30 = sshll.u32 %s305_s1, 3 }
  0x23   : > { %p42_p10 = scmp.eq.s32.totalorder %s41_s22, 0  ;;  %s759_s8 = sshll.u32 %s1159_s28, 3 }
  0x24   : > { %s313_s17 = scalar_lea.hbm %s1401_s0, %s759_s8  ;;  %s309_s19 = scalar_lea.vmem [#allocation4], %s758_s30 }
  0x25   : > { %s1315_s10 = scalar_select %p42_p10, %s1151_s26, %s44_s15  }
  0x26   : > { %s317_s20 = sshll.u32 %s309_s19, 4  ;;  %s315_s3 = sshll.u32 %s313_s17, 4  ;;  %s318_s20 = int_to_ptr.vmem [resolvable:$true] %s317_s20  ;;  %s316_s3 = int_to_ptr.hbm [resolvable:$true] %s315_s3 }
  0x27   : > { %p877_p2 = pnand %p887_p5, %p1306_p7  ;;  %s306_s5 = scalar_lea.sflag [#allocation5], %s305_s1 }
  0x28   : > { %326 = sbr.rel (%p1267_p8) target bundleno = 504 (0x1f8), region = 48  ;;  %s1327_s15 = sand.u32 (!%p1267_p8), 1, %s1147_s25  }
  0x29   : > { %879 = dma.hbm_to_vmem [thread:$0]  (!%p877_p2), %s316_s3, 128, %s318_s20, %s306_s5  }
  0x2a   : > { %s761_s22 = sshll.u32 (!%p1267_p8), %s1327_s15, 3  ;;  %s329_s30 = scalar_lea.sflag (!%p1267_p8), [#allocation5], %s1327_s15 }
  0x2b   : > { %s332_s8 = scalar_lea.vmem (!%p1267_p8), [#allocation4], %s761_s22 }
  0x2d   : > { %1126 = dma.done.wait (%p1254_p4), %s329_s30, 128  }
  0x2e   : > { %1128 = vsyncadd (%p1254_p4), %s329_s30, 4294967168 }
  0x2f   : > { %1130 = dma.done.wait (%p1244_p1), [#allocation8], 1040  }
  0x30   : > { %1132 = vsyncadd (%p1244_p1), [#allocation8], 4294966256 }
  0x31   : > { %1134 = dma.done.wait (%p1244_p1), [#allocation11], 1024  }
  0x32   : > { %1136 = vsyncadd (%p1244_p1), [#allocation11], 4294966272  ;;  %v1345_v0 = vld [vmem:[%s332_s8] sm:$0xff]  ;;  %v838_v5 = vld [vmem:[#allocation9 + $0x20] sm:$0xff]  ;;  %s831_s16 = sshll.u32 %s1155_s27, 3  ;;  %s381_s19 = scalar_lea.vmem [#allocation12], %s761_s22 }
  0x33   : > { %391 = vadd.xlane.f32.xlu0 %v1345_v0  ;;  %v393_v1 = vmul.f32 %v1345_v0, %v1345_v0  ;;  %v841_v2 = vld [vmem:[#allocation9 + $0x38] sm:$0xff]  ;;  %v840_v3 = vld [vmem:[#allocation9 + $0x30] sm:$0xff]  ;;  %v839_v4 = vld [vmem:[#allocation9 + $0x28] sm:$0xff]  ;;  %s622_s17 = scalar_lea.hbm %s1408_s7, %s831_s16  ;;  %s624_s20 = sshll.u32 %s381_s19, 4  ;;  %s625_s20 = int_to_ptr.vmem [resolvable:$true] %s624_s20 }
  0x34   : > { %496 = vmatpush.bf16.msra.mxu0 %v841_v2  ;;  %v837_v7 = vld [vmem:[#allocation9 + $0x18] sm:$0xff]  ;;  %v836_v9 = vld [vmem:[#allocation9 + $0x10] sm:$0xff]  ;;  %v835_v13 = vld [vmem:[#allocation9 + $0x8] sm:$0xff]  ;;  %s626_s30 = sshll.u32 %s622_s17, 4  ;;  %s612_s27 = scalar_lea.sflag [#allocation6], %s1327_s15  ;;  %s627_s30 = int_to_ptr.hbm [resolvable:$true] %s626_s30 }
  0x35   : > { %v834_v15 = vld [vmem:[#allocation9] sm:$0xff]  ;;  %v849_v18 = vld [vmem:[#allocation10 + $0x38] sm:$0xff]  ;;  %v946_v28 = vld [vmem:[%s1403_s2] ss:$0 sm:$0xff]  ;;  %s1087_s8 = sshra.s32 %s627_s30, 4  ;;  %s1093_s22 = scalar_lea.hbm %s1408_s7, 16  ;;  %s1088_s8 = int_to_ptr.hbm [resolvable:$true] %s1087_s8 }
  0x36   : > { %584 = vmatpush.bf16.msra.mxu1 %v849_v18  ;;  %v945_v26 = vld [vmem:[#allocation7] ss:$0 sm:$0xff]  ;;  %v848_v34 = vld [vmem:[#allocation10 + $0x30] sm:$0xff]  ;;  %v847_v35 = vld [vmem:[#allocation10 + $0x28] sm:$0xff]  ;;  %s1089_s3 = scalar_lea.hbm %s1088_s8, 8  ;;  %p1094_p11 = scmp.lt.s32.totalorder %s1088_s8, %s1408_s7 }
  0x37   : > { %v846_v36 = vld [vmem:[#allocation10 + $0x20] sm:$0xff]  ;;  %v845_v37 = vld [vmem:[#allocation10 + $0x18] sm:$0xff]  ;;  %v844_v38 = vld [vmem:[#allocation10 + $0x10] sm:$0xff]  ;;  %p1090_p1 = scmp.ne.s32.totalorder %s1088_s8, %s1089_s3  ;;  %p1095_p12 = scmp.lt.s32.totalorder %s1093_s22, %s1089_s3 }
  0x38   : > { %497 = vmatpush.bf16.msra.mxu0 %v840_v3  ;;  %v843_v39 = vld [vmem:[#allocation10 + $0x8] sm:$0xff]  ;;  %v842_v40 = vld [vmem:[#allocation10] sm:$0xff] }
  0x39   : > { %v947_v41 = vld [vmem:[%s1405_s4] ss:$0 sm:$0xff]  ;;  %p1091_p4 = pnand %p1090_p1, %p1299_p3  ;;  %p1096_p13 = por %p1095_p12, %p1094_p11 }
  0x3a   : > { %585 = vmatpush.bf16.msra.mxu1 %v848_v34  ;;  %v948_v55 = vld [vmem:[%s1407_s6] ss:$0 sm:$0xff] }
  0x3b   : > { %394 = vadd.xlane.f32.xlu0 %v393_v1  ;;  %p1092_p8 = pneg %p1091_p4 }
  0x3c   : > { %498 = vmatpush.bf16.msra.mxu0 %v839_v4 }
  0x3d   : > { %p1097_p0 = pnand %p1096_p13, %p1092_p8 }
  0x3e   : > { %586 = vmatpush.bf16.msra.mxu1 %v847_v35 }
  0x40   : > { %499 = vmatpush.bf16.msra.mxu0 %v838_v5 }
  0x42   : > { %587 = vmatpush.bf16.msra.mxu1 %v846_v36 }
  0x44   : > { %500 = vmatpush.bf16.msra.mxu0 %v837_v7 }
  0x46   : > { %588 = vmatpush.bf16.msra.mxu1 %v845_v37 }
  0x48   : > { %501 = vmatpush.bf16.msra.mxu0 %v836_v9 }
  0x4a   : > { %589 = vmatpush.bf16.msra.mxu1 %v844_v38 }
  0x4c   : > { %502 = vmatpush.bf16.msra.mxu0 %v835_v13 }
  0x4e   : > { %590 = vmatpush.bf16.msra.mxu1 %v843_v39 }
  0x50   : > { %503 = vmatpush.bf16.msra.mxu0 %v834_v15 }
  0x52   : > { %591 = vmatpush.bf16.msra.mxu1 %v842_v40 }
  0xa6   : > { %v392_v6 = vpop.xlane.xlu0 %391 }
  0xa7   : > { %v396_v8 = vmul.f32 0.03125, %v392_v6 }
  0xa9   : > { %v398_v11 = vmul.f32 %v396_v8, %v396_v8  ;;  %v401_v25 = vsub.f32 %v1345_v0, %v396_v8 }
  0xae   : > { %v395_v10 = vpop.xlane.xlu0 %394 }
  0xaf   : > { %v397_v12 = vmul.f32 0.03125, %v395_v10 }
  0xb1   : > { %v399_v14 = vsub.f32 %v397_v12, %v398_v11 }
  0xb3   : > { %v400_v16 = vmax.f32 %v399_v14, 0.0 }
  0xb5   : > { %v402_v17 = vadd.f32 1e-05, %v400_v16 }
  0xb7   : > { %949 = vrsqrt.f32 %v402_v17  ;;  %vm409_vm1 = vweird.f32 %v402_v17 }
  0xbd   : > { %v950_v19 = vpop.eup %949 }
  0xbe   : > { %v404_v20 = vmul.f32 %v950_v19, %v402_v17  ;;  %vm410_vm0 = vweird.f32 %v950_v19 }
  0xbf   : > { %vm411_vm2 = vmor %vm409_vm1, %vm410_vm0 }
  0xc0   : > { %v405_v21 = vmul.f32 %v950_v19, %v404_v20 }
  0xc2   : > { %v406_v22 = vmul.f32 0.5, %v405_v21 }
  0xc4   : > { %v407_v23 = vsub.f32 1.5, %v406_v22 }
  0xc6   : > { %v408_v24 = vmul.f32 %v950_v19, %v407_v23 }
  0xc8   : > { %v412_v27 = vsel %vm411_vm2, %v950_v19, %v408_v24 }
  0xc9   : > { %v413_v29 = vmul.f32 %v412_v27, %v401_v25 }
  0xcb   : > { %v418_v30 = vmul.f32 %v945_v26, %v413_v29 }
  0xcd   : > { %v423_v31 = vadd.f32 %v946_v28, %v418_v30 }
  0xcf   : > { %v424_v32 = vpack.c.bf16 %v423_v31, %v423_v31 }
  0xd1   : > { %425 = vst [vmem:[#allocation2] sm:$0xf] %v424_v32 }
  0xd8   : > { %v427_v33 = vld [vmem:[#allocation2] sm:$0xf] }
  0xd9   : > { %504 = vmatmul.bf16.vlgmr.msra.gmra.mxu0 %v427_v33 }
 0x156   : > { %v505_v42 = vpop.f32.mrf.mxu0 }
 0x157   : > { %v506_v43 = vadd.f32 %v947_v41, %v505_v42 }
 0x159   : > { %v509_v44 = vmul.f32 %v506_v43, %v506_v43 }
 0x15b   : > { %v510_v45 = vmul.f32 %v509_v44, %v506_v43 }
 0x15d   : > { %v511_v46 = vmul.f32 0.044715, %v510_v45 }
 0x15e   : > { %v507_v47 = vpop.f32.mrf.mxu0 }
 0x15f   : > { %v512_v48 = vadd.f32 %v511_v46, %v506_v43 }
 0x161   : > { %v513_v49 = vmul.f32 0.7978846, %v512_v48 }
 0x163   : > { %951 = vtanh.f32 %v513_v49 }
 0x169   : > { %v952_v50 = vpop.eup %951 }
 0x16a   : > { %v515_v51 = vadd.f32 1.0, %v952_v50 }
 0x16c   : > { %v516_v52 = vmul.f32 0.5, %v515_v51 }
 0x16e   : > { %v517_v53 = vmul.f32 %v516_v52, %v506_v43 }
 0x170   : > { %v519_v54 = vpack.c.bf16 %v517_v53, %v517_v53 }
 0x172   : > { %592 = vmatmul.bf16.vlgmr.msra.gmra.mxu1 %v519_v54 }
 0x1ef   : > { %v593_v56 = vpop.f32.mrf.mxu1 }
 0x1f0   : > { %v607_v57 = vadd.f32 %v948_v55, %v593_v56 }
 0x1f2   : > { %v609_v58 = vadd.f32 %v607_v57, %v1345_v0 }
 0x1f4   : > { %610 = vst [vmem:[%s381_s19] sm:$0xff] %v609_v58 }
 0x1f5   : > { %1100 = shalt.err (!%p1097_p0)
}
 0x1f6   : > { %864 = dma.vmem_to_hbm [thread:$0]  (%p1299_p3), %s625_s20, 128, %s627_s30, %s612_s27  }
 0x1f7   : > { %v595_v59 = vpop.f32.mrf.mxu1 }
 0x1f8 PF: > { %s638_s15 = sand.u32 1, %s1143_s24   ;;  %p881_p5 = pnand %p757_p9, %p1259_p6 }
 0x1f9   : > { %s639_s23 = scalar_lea.sflag [#allocation6], %s638_s15 }
 0x1fa   : > { %p882_p7 = pneg %p881_p5 }
 0x1fc   : > { %1138 = dma.done.wait (%p882_p7), %s639_s23, 128  }
 0x1fd   : > { %1140 = vsyncadd (%p882_p7), %s639_s23, 4294967168  ;;  %s25_s29 = sadd.s32 1, %s1163_s29   ;;  %s1423_s24 = smov %s1147_s25 }
 0x1fe   : > { %p22_p10 = scmp.ge.s32.totalorder %s25_s29, 4   ;;  %s1424_s25 = smov %s1151_s26 }
 0x1ff   : > { %s1425_s26 = smov %s1315_s10  ;;  %s1426_s27 = smov %s1159_s28 }
 0x200   : > { %s1427_s28 = smov %s1429_s18  ;;  %24 = sbr.rel (!%p22_p10) target bundleno = 12 (0xc), region = 118 }
 0x205   :  { %645 = vsyncpa [#allocation5], 1 }
 0x206   :  { %647 = vsyncpa [#allocation5 + $0x1], 1 }
 0x207   :  { %648 = vsyncpa [#allocation8], 1 }
 0x208   :  { %649 = vsyncpa [#allocation11], 1 }
 0x209   :  { %650 = vsyncpa [#allocation6], 1 }
 0x20a   :  { %652 = vsyncpa [#allocation6 + $0x1], 1 }

</bundles_post_ra>
